<compile_context>
chip_gen: v7x
topology: tpu7x:2x2x1
jax: 0.10.0
libtpu: 0.0.40
codegen_flags: <defaults>
</compile_context>

<pallas_src>
import functools

import jax
import jax.numpy as jnp
from jax.experimental import pallas as pl
from jax.experimental.pallas import tpu as pltpu


FOCUSING_PARAM = 2.0     # sigmoid^2 trick below assumes this is exactly 2
BALANCE_PARAM = 0.25
OHEM_PERCENT = 0.5
NUM_CLASSES = 2

_DEFAULT_BLOCK_ROWS = 1024   # 1024 x 512 f32 = 2 MiB per stream per buffer
_DEFAULT_LANES = 512         # lane-dense (multiple of 128) -> unmasked vst runs
_ROW_ALIGN = 32              # keep int8 second-minor tiling (32, 128) happy


def _round_up(a, b):
    return ((a + b - 1) // b) * b


def _focal_kernel(x_ref, t_ref, loss_ref, *, m, block_rows, lanes):
    """Focal BCE-with-logits on one (block_rows, lanes) tile; pads -> -inf."""
    x = x_ref[...]                                  # f32 logits
    t = t_ref[...].astype(jnp.float32)              # int8 {0,1} -> f32

    # Shared transcendentals: e = exp(-|x|), sp = log1p(e) = softplus(-|x|).
    e = jnp.exp(-jnp.abs(x))
    sp = jnp.log1p(e)

    # Stable BCE-with-logits, algebraically identical to the PyTorch
    # max_val formulation:  x - x*t + max(-x,0) + log(exp(-max)+exp(-x-max)).
    bce = jnp.maximum(x, 0.0) - x * t + sp

    # Focal weight exp(focusing_param * logsigmoid(z)), z = -x*(2t-1).
    # focusing_param == 2  =>  sigmoid(z)^2; since |z| == |x| we reuse e:
    #   sigmoid(z) = 1/(1+e) if z >= 0 else e/(1+e)
    z = x * (1.0 - 2.0 * t)
    inv = pl.reciprocal(1.0 + e, approx=False)      # exact: keeps OHEM ordering
    sig = jnp.where(z >= 0.0, inv, e * inv)
    focal = BALANCE_PARAM * sig * sig * bce

    # Mask padded tail to -inf so pads can never enter the OHEM top-k.
    i = pl.program_id(0)
    row = jax.lax.broadcasted_iota(jnp.int32, x.shape, 0)
    lane = jax.lax.broadcasted_iota(jnp.int32, x.shape, 1)
    flat_idx = (i * block_rows + row) * lanes + lane
    loss_ref[...] = jnp.where(flat_idx < m, focal, -jnp.inf)


def _focal_elementwise(x_flat, t_flat_i8, *, block_rows, lanes):
    """Run the Pallas kernel over a padded lane-dense (rows, lanes) slab."""
    m = x_flat.shape[0]
    rows = _round_up(pl.cdiv(m, lanes), _ROW_ALIGN)
    block_rows = min(block_rows, rows)              # both multiples of 32
    rows_pad = _round_up(rows, block_rows)
    grid = rows_pad // block_rows
    pad = rows_pad * lanes - m

    x = jnp.pad(x_flat, (0, pad)).reshape(rows_pad, lanes)
    t = jnp.pad(t_flat_i8, (0, pad)).reshape(rows_pad, lanes)

    kernel = functools.partial(
        _focal_kernel, m=m, block_rows=block_rows, lanes=lanes)

    focal = pl.pallas_call(
        kernel,
        out_shape=jax.ShapeDtypeStruct((rows_pad, lanes), jnp.float32),
        grid_spec=pltpu.PrefetchScalarGridSpec(
            num_scalar_prefetch=0,
            grid=(grid,),
            in_specs=[
                pl.BlockSpec((block_rows, lanes), lambda i: (i, 0)),
                pl.BlockSpec((block_rows, lanes), lambda i: (i, 0)),
            ],
            out_specs=pl.BlockSpec((block_rows, lanes), lambda i: (i, 0)),
        ),
        compiler_params=pltpu.CompilerParams(
            dimension_semantics=("parallel",),
        ),
    )(x, t)

    # Padded entries are -inf; no slice needed before the top-k.
    return focal.reshape(-1)


@functools.partial(jax.jit, static_argnames=("block_rows", "lanes"))
def focal_ohem_mid_loss(output, target,
                        block_rows=_DEFAULT_BLOCK_ROWS, lanes=_DEFAULT_LANES):
    """Forward pass of FocalOHEMMidLoss.

    output: (N, 2) float logits.   target: (N,) int class ids in {0, 1}.
    """
    x = output.reshape(-1).astype(jnp.float32)
    m = x.shape[0]
    t = jax.nn.one_hot(target, NUM_CLASSES, dtype=jnp.int8).reshape(-1)

    focal = _focal_elementwise(x, t, block_rows=block_rows, lanes=lanes)

    # TODO(synk): the OHEM rank selection (torch.topk) has no clean Pallas TPU
    # equivalent; done with jax.lax.top_k on the kernel output (pads are -inf
    # and k1 <= m, so they can never be selected).
    k1 = int(OHEM_PERCENT * m)          # hardest 50% (largest focal values)
    k2 = int(0.9 * k1)                  # of those, keep the smallest 90%
    top = jax.lax.top_k(focal, k1)[0]   # sorted descending
    return jnp.mean(top[k1 - k2:k1])


def _reference(output, target):
    """Pure-JAX reference mirroring the PyTorch code (sanity check)."""
    t = jax.nn.one_hot(target, NUM_CLASSES, dtype=jnp.float32).reshape(-1)
    x = output.reshape(-1).astype(jnp.float32)
    max_val = jnp.maximum(-x, 0.0)
    loss = x - x * t + max_val + jnp.log(jnp.exp(-max_val) + jnp.exp(-x - max_val))
    z = -x * (t * 2.0 - 1.0)
    invprobs = jnp.minimum(z, 0.0) - jnp.log1p(jnp.exp(-jnp.abs(z)))
    focal = BALANCE_PARAM * jnp.exp(invprobs * FOCUSING_PARAM) * loss
    m = focal.shape[0]
    k1 = int(OHEM_PERCENT * m)
    k2 = int(0.9 * k1)
    sorted_desc = jnp.sort(focal)[::-1]
    return jnp.mean(sorted_desc[k1 - k2:k1])


if __name__ == "__main__":
    key = jax.random.PRNGKey(0)
    k_out, k_tgt = jax.random.split(key)

    # Primary small test: N=512 samples -> M = 1024 flattened elements.
    N = 512
    output = jax.random.normal(k_out, (N, NUM_CLASSES), dtype=jnp.float32)
    target = jax.random.randint(k_tgt, (N,), 0, NUM_CLASSES, dtype=jnp.int32)

    loss = focal_ohem_mid_loss(output, target)
    jax.block_until_ready(loss)
    ref = _reference(output, target)
    jax.block_until_ready(ref)
    assert jnp.allclose(loss, ref, rtol=1e-4, atol=1e-6), (loss, ref)

    # Second check: force a multi-block grid + padded tail masking.
    N2 = 16000                                   # M = 32000 -> 64 rows of 512
    out2 = jax.random.normal(k_out, (N2, NUM_CLASSES), dtype=jnp.float32)
    tgt2 = jax.random.randint(k_tgt, (N2,), 0, NUM_CLASSES, dtype=jnp.int32)
    loss2 = focal_ohem_mid_loss(out2, tgt2, block_rows=32)   # grid = 2
    jax.block_until_ready(loss2)
    ref2 = _reference(out2, tgt2)
    jax.block_until_ready(ref2)
    assert jnp.allclose(loss2, ref2, rtol=1e-4, atol=1e-6), (loss2, ref2)

    print("KERNEL_OK")
</pallas_src>

<mosaic_0001>
module attributes {stable_mosaic.version = 11 : i64} {
  func.func @_focal_kernel(%arg0: i32, %arg1: memref<32x512xf32, #tpu.memory_space<vmem>>, %arg2: memref<32x512xi8, #tpu.memory_space<vmem>>, %arg3: memref<32x512xf32, #tpu.memory_space<vmem>>) attributes {dimension_semantics = [#tpu.dimension_semantics<parallel>], iteration_bounds = array<i64: 1>, scalar_prefetch = 0 : i64, scratch_operands = 0 : i64, tpu.core_type = #tpu.core_type<tc>, window_params = [{transform_indices = @transform_0, window_bounds = array<i64: 32, 512>}, {transform_indices = @transform_1, window_bounds = array<i64: 32, 512>}, {transform_indices = @transform_2, window_bounds = array<i64: 32, 512>}]} {
    %c0 = arith.constant 0 : index
    %c0_0 = arith.constant 0 : index
    %0 = vector.load %arg1[%c0, %c0_0] : memref<32x512xf32, #tpu.memory_space<vmem>>, vector<32x512xf32>
    %c0_1 = arith.constant 0 : index
    %c0_2 = arith.constant 0 : index
    %1 = vector.load %arg2[%c0_1, %c0_2] : memref<32x512xi8, #tpu.memory_space<vmem>>, vector<32x512xi8>
    %2 = arith.sitofp %1 : vector<32x512xi8> to vector<32x512xf32>
    %3 = math.absf %0 : vector<32x512xf32>
    %cst = arith.constant 0.000000e+00 : f32
    %4 = vector.broadcast %cst : f32 to vector<32x512xf32>
    %5 = arith.subf %4, %3 : vector<32x512xf32>
    %6 = math.exp %5 : vector<32x512xf32>
    %7 = math.log1p %6 : vector<32x512xf32>
    %cst_3 = arith.constant 0.000000e+00 : f32
    %8 = vector.broadcast %cst_3 : f32 to vector<32x512xf32>
    %9 = arith.maximumf %0, %8 : vector<32x512xf32>
    %10 = arith.mulf %0, %2 : vector<32x512xf32>
    %11 = arith.subf %9, %10 : vector<32x512xf32>
    %12 = arith.addf %11, %7 : vector<32x512xf32>
    %cst_4 = arith.constant 2.000000e+00 : f32
    %13 = vector.broadcast %cst_4 : f32 to vector<32x512xf32>
    %14 = arith.mulf %13, %2 : vector<32x512xf32>
    %cst_5 = arith.constant 1.000000e+00 : f32
    %15 = vector.broadcast %cst_5 : f32 to vector<32x512xf32>
    %16 = arith.subf %15, %14 : vector<32x512xf32>
    %17 = arith.mulf %0, %16 : vector<32x512xf32>
    %cst_6 = arith.constant 1.000000e+00 : f32
    %18 = vector.broadcast %cst_6 : f32 to vector<32x512xf32>
    %19 = arith.addf %18, %6 : vector<32x512xf32>
    %20 = tpu.reciprocal %19 : vector<32x512xf32> -> vector<32x512xf32>
    %cst_7 = arith.constant 0.000000e+00 : f32
    %21 = vector.broadcast %cst_7 : f32 to vector<32x512xf32>
    %22 = arith.cmpf oge, %17, %21 : vector<32x512xf32>
    %23 = arith.mulf %6, %20 : vector<32x512xf32>
    %24 = arith.select %22, %20, %23 : vector<32x512xi1>, vector<32x512xf32>
    %cst_8 = arith.constant 2.500000e-01 : f32
    %25 = vector.broadcast %cst_8 : f32 to vector<32x512xf32>
    %26 = arith.mulf %25, %24 : vector<32x512xf32>
    %27 = arith.mulf %26, %24 : vector<32x512xf32>
    %28 = arith.mulf %27, %12 : vector<32x512xf32>
    %29 = tpu.iota {dimensions = array<i32: 0>} : vector<32x512xi32>
    %30 = tpu.iota {dimensions = array<i32: 1>} : vector<32x512xi32>
    %c32_i32 = arith.constant 32 : i32
    %31 = arith.muli %arg0, %c32_i32 : i32
    %32 = vector.broadcast %31 : i32 to vector<32x512xi32>
    %33 = arith.addi %32, %29 : vector<32x512xi32>
    %c512_i32 = arith.constant 512 : i32
    %34 = vector.broadcast %c512_i32 : i32 to vector<32x512xi32>
    %35 = arith.muli %33, %34 : vector<32x512xi32>
    %36 = arith.addi %35, %30 : vector<32x512xi32>
    %c1024_i32 = arith.constant 1024 : i32
    %37 = vector.broadcast %c1024_i32 : i32 to vector<32x512xi32>
    %38 = arith.cmpi slt, %36, %37 : vector<32x512xi32>
    %cst_9 = arith.constant 0xFF800000 : f32
    %39 = vector.broadcast %cst_9 : f32 to vector<32x512xf32>
    %40 = arith.select %38, %28, %39 : vector<32x512xi1>, vector<32x512xf32>
    %c0_10 = arith.constant 0 : index
    %c0_11 = arith.constant 0 : index
    %41 = vector.load %arg3[%c0_10, %c0_11] : memref<32x512xf32, #tpu.memory_space<vmem>>, vector<32x512xf32>
    tpu.vector_store %arg3[%c0_10, %c0_11], %40 {strides = array<i32>} : memref<32x512xf32, #tpu.memory_space<vmem>>, vector<32x512xf32>,
    return
  }
  func.func @transform_0(%arg0: i32) -> (i32, i32) {
    %c0_i32 = arith.constant 0 : i32
    %c0_i32_0 = arith.constant 0 : i32
    return %arg0, %c0_i32 : i32, i32
  }
  func.func @transform_1(%arg0: i32) -> (i32, i32) {
    %c0_i32 = arith.constant 0 : i32
    %c0_i32_0 = arith.constant 0 : i32
    return %arg0, %c0_i32 : i32, i32
  }
  func.func @transform_2(%arg0: i32) -> (i32, i32) {
    %c0_i32 = arith.constant 0 : i32
    %c0_i32_0 = arith.constant 0 : i32
    return %arg0, %c0_i32 : i32, i32
  }
}

</mosaic_0001>

<bundles_post_ra>
// kernel: focal_ohem_mid_loss.1
= control target key start
LH: loop header
LB: loop body
LE: loop exit
PB: predicated region body
PF: predicated region fallthrough
CT: control target
= control target key end

     0   :  { %v511_v16 = vlaneseq  ;;  %s1249_s0 = inlined_call_operand.vmem [shape: f32[32,512], index: 0, kind: input, shape index: {}]   ;;  %s1250_s1 = inlined_call_operand.vmem [shape: s8[32,512], index: 1, kind: input, shape index: {}]   ;;  %s1251_s2 = inlined_call_operand.vmem [shape: f32[32,512], index: 2, kind: output, shape index: {}]  }
   0x1   :  { %v11_v0 = vld [vmem:[%s1249_s0] sm:$0xff]  ;;  %v12_v2 = vld [vmem:[%s1249_s0 + $0x8] sm:$0xff]  ;;  %v729_v6 = vld [vmem:[%s1249_s0 + $0x10] sm:$0xff] }
   0x2   :  { %v716_v1 = vld [vmem:[%s1250_s1] sm:$0xff]  ;;  %v63_v3 = vand.u32 2147483647, %v11_v0  ;;  %v724_v4 = vld [vmem:[%s1250_s1 + $0x8] sm:$0xff]  ;;  %v64_v5 = vand.u32 2147483647, %v12_v2 }
   0x3   :  { %v31_v7 = vunpack.c.0.s8 %v716_v1  ;;  %v32_v9 = vunpack.c.0.s8 %v724_v4  ;;  %v65_v12 = vand.u32 2147483647, %v729_v6  ;;  %v737_v14 = vld [vmem:[%s1250_s1 + $0x10] sm:$0xff]  ;;  %v742_v17 = vld [vmem:[%s1249_s0 + $0x18] sm:$0xff]  ;;  %v750_v22 = vand.u32 127, %v511_v16  ;;  %v759_v30 = vld [vmem:[%s1249_s0 + $0x20] sm:$0xff] }
   0x4   :  { %v79_v8 = vsub.f32 0.0, %v63_v3  ;;  %v80_v10 = vsub.f32 0.0, %v64_v5  ;;  %v33_v19 = vunpack.c.0.s8 %v737_v14  ;;  %v748_v21 = vld [vmem:[%s1250_s1 + $0x18] sm:$0xff]  ;;  %v66_v23 = vand.u32 2147483647, %v742_v17 }
   0x5   :  { %v47_v15 = vcvt.s32.f32 %v31_v7  ;;  %v48_v18 = vcvt.s32.f32 %v32_v9  ;;  %v81_v20 = vsub.f32 0.0, %v65_v12  ;;  %v753_v25 = vshrl.u32 %v511_v16, 7 }
   0x6   :  { %v95_v11 = vmul.f32 1.442695, %v79_v8  ;;  %v97_v13 = vmul.f32 1.442695, %v80_v10  ;;  %v34_v28 = vunpack.c.0.s8 %v748_v21  ;;  %v82_v29 = vsub.f32 0.0, %v66_v23  ;;  %v812_v8 = vld [vmem:[%s1249_s0 + $0x28] sm:$0xff] }
   0x7   :  { %v335_v24 = vmul.f32 2.0, %v47_v15  ;;  %v99_v26 = vmul.f32 1.442695, %v81_v20  ;;  %v336_v27 = vmul.f32 2.0, %v48_v18  ;;  %v762_v31 = vmul.u32 512, %v753_v25 }
   0x8   :  { %599 = vpow2.f32 %v95_v11  ;;  %v49_v32 = vcvt.s32.f32 %v33_v19  ;;  %v271_v33 = vmax.f32 %v11_v0, 0.0  ;;  %v287_v34 = vmul.f32 %v47_v15, %v11_v0 }
   0x9   :  { %601 = vpow2.f32 %v97_v13  ;;  %v765_v35 = vadd.s32 128, %v750_v22  ;;  %v101_v36 = vmul.f32 1.442695, %v82_v29  ;;  %v351_v37 = vsub.f32 1.0, %v335_v24 }
   0xa   :  { %603 = vpow2.f32 %v99_v26  ;;  %v272_v38 = vmax.f32 %v12_v2, 0.0  ;;  %v67_v39 = vand.u32 2147483647, %v759_v30  ;;  %v288_v40 = vmul.f32 %v48_v18, %v12_v2 }
   0xb   :  { %v352_v41 = vsub.f32 1.0, %v336_v27  ;;  %v50_v42 = vcvt.s32.f32 %v34_v28  ;;  %605 = vpow2.f32 %v101_v36  ;;  %v772_v44 = vadd.s32 %v762_v31, %v750_v22 }
   0xc   :  { %v337_v45 = vmul.f32 2.0, %v49_v32  ;;  %v83_v46 = vsub.f32 0.0, %v67_v39  ;;  %v777_v49 = vsub.f32 %v271_v33, %v287_v34  ;;  %v781_v50 = vadd.s32 %v762_v31, %v765_v35 }
   0xd   :  { %v784_v51 = vadd.s32 256, %v750_v22  ;;  %v786_v52 = vmul.f32 %v351_v37, %v11_v0  ;;  %v273_v54 = vmax.f32 %v729_v6, 0.0  ;;  %v289_v55 = vmul.f32 %v49_v32, %v729_v6 }
   0xe   :  { %v791_v56 = vsub.f32 %v272_v38, %v288_v40  ;;  %v793_v57 = vmul.f32 %v352_v41, %v12_v2  ;;  %v338_v58 = vmul.f32 2.0, %v50_v42  ;;  %v353_v60 = vsub.f32 1.0, %v337_v45 }
   0xf   :  { %v103_v61 = vmul.f32 1.442695, %v83_v46  ;;  %v798_v62 = vadd.s32 %v762_v31, %v784_v51  ;;  %v274_v63 = vmax.f32 %v742_v17, 0.0  ;;  %v290_v0 = vmul.f32 %v50_v42, %v742_v17 }
  0x10   :  { %vm415_vm0 = vcmp.ge.f32.partialorder %v786_v52, 0.0  ;;  %v806_v5 = vsub.f32 %v273_v54, %v289_v55  ;;  %v35_v7 = vunpack.c.1.s8 %v716_v1  ;;  %v354_v10 = vsub.f32 1.0, %v338_v58 }
  0x11   :  { %v816_v11 = vadd.s32 384, %v750_v22  ;;  %vm416_vm1 = vcmp.ge.f32.partialorder %v793_v57, 0.0  ;;  %v822_v16 = vmul.f32 %v353_v60, %v729_v6  ;;  %v827_v20 = vsub.f32 %v274_v63, %v290_v0 }
  0x12   :  { %v768_v43 = vpop.eup %599  ;;  %v68_v23 = vand.u32 2147483647, %v812_v8  ;;  %v51_v27 = vcvt.s32.f32 %v35_v7  ;;  %v832_v28 = vmul.f32 %v354_v10, %v742_v17  ;;  %v275_v29 = vmax.f32 %v759_v30, 0.0 }
  0x13   :  { %v774_v47 = vpop.eup %601  ;;  %v127_v48 = vadd.f32 1.0, %v768_v43  ;;  %v130_v59 = vmul.f32 -0.5, %v768_v43  ;;  %v133_v13 = vand.u32 2147483647, %v768_v43  ;;  %v836_v6 = vadd.s32 %v762_v31, %v816_v11 }
  0x14   :  { %v136_v53 = vadd.f32 1.0, %v774_v47  ;;  %v802_v3 = vpop.eup %603  ;;  %v139_v2 = vmul.f32 -0.5, %v774_v47  ;;  %v142_v15 = vand.u32 2147483647, %v774_v47  ;;  %v84_v32 = vsub.f32 0.0, %v68_v23  ;;  %v939_v23 = vld [vmem:[%s1249_s0 + $0x38] sm:$0xff] }
  0x15   :  { %607 = vlog2.f32 %v127_v48  ;;  %v145_v9 = vadd.f32 1.0, %v802_v3  ;;  %v131_v12 = vadd.f32 1.0, %v130_v59  ;;  %v824_v18 = vpop.eup %605  ;;  %v148_v19 = vmul.f32 -0.5, %v802_v3 }
  0x16   :  { %609 = vrcp.f32 %v127_v48  ;;  %v140_v24 = vadd.f32 1.0, %v139_v2  ;;  %v154_v26 = vadd.f32 1.0, %v824_v18  ;;  %vm840_vm2 = vcmp.lt.f32.partialorder %v133_v13, 0.0004427343 }
  0x17   :  { %611 = vlog2.f32 %v136_v53  ;;  %v132_v33 = vmul.f32 %v768_v43, %v131_v12  ;;  %vm844_vm3 = vcmp.lt.f32.partialorder %v142_v15, 0.0004427343  ;;  %vm417_vm4 = vcmp.ge.f32.partialorder %v822_v16, 0.0 }
  0x18   :  { %613 = vrcp.f32 %v136_v53  ;;  %vm547_vm5 = vcmp.lt.s32.totalorder %v772_v44, 1024  ;;  %v149_v31 = vadd.f32 1.0, %v148_v19  ;;  %v157_v37 = vmul.f32 -0.5, %v824_v18 }
  0x19   :  { %615 = vpow2.f32 %v103_v61  ;;  %v105_v38 = vmul.f32 1.442695, %v84_v32  ;;  %v141_v41 = vmul.f32 %v774_v47, %v140_v24  ;;  %v853_v42 = vmul.f32 %v51_v27, %v759_v30 }
  0x1a   :  { %617 = vlog2.f32 %v145_v9  ;;  %v855_v45 = vmul.f32 2.0, %v51_v27  ;;  %vm548_vm6 = vcmp.lt.s32.totalorder %v781_v50, 1024  ;;  %v151_v53 = vand.u32 2147483647, %v802_v3 }
  0x1b   :  { %619 = vrcp.f32 %v145_v9  ;;  %vm418_vm7 = vcmp.ge.f32.partialorder %v832_v28, 0.0  ;;  %v513_v54 = vadd.s32 8, %v753_v25  ;;  %v160_v60 = vand.u32 2147483647, %v824_v18 }
  0x1c   :  { %621 = vlog2.f32 %v154_v26  ;;  %v36_v61 = vunpack.c.1.s8 %v724_v4  ;;  %v150_v2 = vmul.f32 %v802_v3, %v149_v31  ;;  %v158_v7 = vadd.f32 1.0, %v157_v37 }
  0x1d   :  { %623 = vrcp.f32 %v154_v26  ;;  %vm879_vm8 = vcmp.lt.f32.partialorder %v151_v53, 0.0004427343  ;;  %vm549_vm9 = vcmp.lt.s32.totalorder %v798_v62, 1024  ;;  %vm890_vm10 = vcmp.lt.f32.partialorder %v160_v60, 0.0004427343 }
  0x1e   :  { %625 = vpow2.f32 %v105_v38  ;;  %vm550_vm11 = vcmp.lt.s32.totalorder %v836_v6, 1024  ;;  %v307_v62 = vsub.f32 %v275_v29, %v853_v42  ;;  %v962_v6 = vld [vmem:[%s1249_s0 + $0x40] sm:$0xff]  ;;  %v276_v31 = vmax.f32 %v812_v8, 0.0 }
  0x1f   :  { %v608_v17 = vpop.eup %607 }
  0x20   :  { %v610_v39 = vpop.eup %609  ;;  %v129_v40 = vmul.f32 0.6931472, %v608_v17 }
  0x21   :  { %v612_v46 = vpop.eup %611  ;;  %v431_v48 = vmul.f32 %v610_v39, %v768_v43 }
  0x22   :  { %v614_v55 = vpop.eup %613  ;;  %v135_v58 = vsel %vm840_vm2, %v132_v33, %v129_v40  ;;  %v138_v59 = vmul.f32 0.6931472, %v612_v46 }
  0x23   :  { %v866_v63 = vpop.eup %615  ;;  %v447_v43 = vsel %vm415_vm0, %v610_v39, %v431_v48  ;;  %v432_v0 = vmul.f32 %v614_v55, %v774_v47  ;;  %v319_v9 = vadd.f32 %v777_v49, %v135_v58  ;;  %v355_v47 = vsub.f32 1.0, %v855_v45 }
  0x24   :  { %v463_v10 = vmul.f32 0.25, %v447_v43  ;;  %v144_v12 = vsel %vm844_vm3, %v141_v41, %v138_v59  ;;  %v163_v13 = vadd.f32 1.0, %v866_v63  ;;  %v618_v15 = vpop.eup %617  ;;  %v166_v57 = vmul.f32 -0.5, %v866_v63 }
  0x25   :  { %v320_v19 = vadd.f32 %v791_v56, %v144_v12  ;;  %v448_v52 = vsel %vm416_vm1, %v614_v55, %v432_v0  ;;  %v620_v49 = vpop.eup %619  ;;  %v147_v27 = vmul.f32 0.6931472, %v618_v15  ;;  %v159_v56 = vmul.f32 %v824_v18, %v158_v7 }
  0x26   :  { %v479_v24 = vmul.f32 %v463_v10, %v447_v43  ;;  %v464_v26 = vmul.f32 0.25, %v448_v52  ;;  %627 = vlog2.f32 %v163_v13  ;;  %v433_v32 = vmul.f32 %v620_v49, %v802_v3  ;;  %v622_v33 = vpop.eup %621  ;;  %v898_v3 = vld [vmem:[%s1249_s0 + $0x30] sm:$0xff] }
  0x27   :  { %629 = vrcp.f32 %v163_v13  ;;  %v153_v17 = vsel %vm879_vm8, %v150_v2, %v147_v27  ;;  %v624_v37 = vpop.eup %623  ;;  %v156_v40 = vmul.f32 0.6931472, %v622_v33  ;;  %v52_v41 = vcvt.s32.f32 %v36_v61  ;;  %v986_v13 = vld [vmem:[%s1249_s0 + $0x48] sm:$0xff] }
  0x28   :  { %v495_v34 = vmul.f32 %v479_v24, %v319_v9  ;;  %v480_v36 = vmul.f32 %v464_v26, %v448_v52  ;;  %v321_v38 = vadd.f32 %v806_v5, %v153_v17  ;;  %v449_v39 = vsel %vm417_vm4, %v620_v49, %v433_v32  ;;  %v906_v55 = vpop.eup %625 }
  0x29   :  { %v465_v48 = vmul.f32 0.25, %v449_v39  ;;  %v434_v53 = vmul.f32 %v624_v37, %v824_v18  ;;  %v162_v5 = vsel %vm890_vm10, %v159_v56, %v156_v40  ;;  %v167_v16 = vadd.f32 1.0, %v166_v57 }
  0x2a   :  { %v563_v45 = vsel %vm547_vm5, %v495_v34, -inf  ;;  %v496_v46 = vmul.f32 %v480_v36, %v320_v19  ;;  %v169_v58 = vand.u32 2147483647, %v866_v63  ;;  %v69_v59 = vand.u32 2147483647, %v898_v3 }
  0x2b   :  { %579 = vst [vmem:[%s1251_s2] sm:$0xff] %v563_v45  ;;  %v481_v60 = vmul.f32 %v465_v48, %v449_v39  ;;  %v450_v18 = vsel %vm418_vm7, %v624_v37, %v434_v53  ;;  %v919_v61 = vmul.u32 512, %v513_v54  ;;  %v322_v43 = vadd.f32 %v827_v20, %v162_v5 }
  0x2c   :  { %v564_v44 = vsel %vm548_vm6, %v496_v46, -inf  ;;  %v466_v0 = vmul.f32 0.25, %v450_v18  ;;  %v371_v2 = vmul.f32 %v355_v47, %v759_v30  ;;  %v172_v7 = vadd.f32 1.0, %v906_v55 }
  0x2d   :  { %580 = vst [vmem:[%s1251_s2 + $0x8] sm:$0xff] %v564_v44  ;;  %v497_v9 = vmul.f32 %v481_v60, %v321_v38  ;;  %v340_v50 = vmul.f32 2.0, %v52_v41  ;;  %v37_v10 = vunpack.c.1.s8 %v737_v14  ;;  %v85_v12 = vsub.f32 0.0, %v69_v59 }
  0x2e   :  { %v482_v28 = vmul.f32 %v466_v0, %v450_v18  ;;  %v168_v54 = vmul.f32 %v866_v63, %v167_v16  ;;  %vm929_vm12 = vcmp.lt.f32.partialorder %v169_v58, 0.0004427343  ;;  %631 = vlog2.f32 %v172_v7 }
  0x2f   :  { %v565_v20 = vsel %vm549_vm9, %v497_v9, -inf  ;;  %v175_v19 = vmul.f32 -0.5, %v906_v55  ;;  %633 = vrcp.f32 %v172_v7  ;;  %v107_v52 = vmul.f32 1.442695, %v85_v12 }
  0x30   :  { %v628_v15 = vpop.eup %627  ;;  %581 = vst [vmem:[%s1251_s2 + $0x10] sm:$0xff] %v565_v20  ;;  %v498_v49 = vmul.f32 %v482_v28, %v322_v43  ;;  %vm419_vm13 = vcmp.ge.f32.partialorder %v371_v2, 0.0  ;;  %v356_v27 = vsub.f32 1.0, %v340_v50  ;;  %v535_v57 = vadd.s32 %v919_v61, %v750_v22 }
  0x31   :  { %v630_v47 = vpop.eup %629  ;;  %v165_v24 = vmul.f32 0.6931472, %v628_v15  ;;  %635 = vpow2.f32 %v107_v52  ;;  %v70_v33 = vand.u32 2147483647, %v939_v23  ;;  %v176_v29 = vadd.f32 1.0, %v175_v19 }
  0x32   :  { %v435_v26 = vmul.f32 %v630_v47, %v866_v63  ;;  %v566_v32 = vsel %vm550_vm11, %v498_v49, -inf  ;;  %v178_v42 = vand.u32 2147483647, %v906_v55  ;;  %v53_v63 = vcvt.s32.f32 %v37_v10 }
  0x33   :  { %v171_v56 = vsel %vm929_vm12, %v168_v54, %v165_v24  ;;  %582 = vst [vmem:[%s1251_s2 + $0x18] sm:$0xff] %v566_v32  ;;  %v86_v17 = vsub.f32 0.0, %v70_v33  ;;  %v292_v37 = vmul.f32 %v52_v41, %v812_v8  ;;  %v372_v38 = vmul.f32 %v356_v27, %v812_v8 }
  0x34   :  { %v451_v30 = vsel %vm419_vm13, %v630_v47, %v435_v26  ;;  %v323_v34 = vadd.f32 %v307_v62, %v171_v56  ;;  %v71_v45 = vand.u32 2147483647, %v962_v6  ;;  %vm551_vm14 = vcmp.lt.s32.totalorder %v535_v57, 1024  ;;  %v993_v47 = vld [vmem:[%s1249_s0 + $0x50] sm:$0xff] }
  0x35   :  { %v467_v36 = vmul.f32 0.25, %v451_v30  ;;  %v109_v40 = vmul.f32 1.442695, %v86_v17  ;;  %v177_v46 = vmul.f32 %v906_v55, %v176_v29  ;;  %vm969_vm15 = vcmp.lt.f32.partialorder %v178_v42, 0.0004427343 }
  0x36   :  { %v341_v53 = vmul.f32 2.0, %v53_v63  ;;  %v38_v58 = vunpack.c.1.s8 %v748_v21  ;;  %v87_v41 = vsub.f32 0.0, %v71_v45  ;;  %v308_v44 = vsub.f32 %v276_v31, %v292_v37 }
  0x37   :  { %v483_v39 = vmul.f32 %v467_v36, %v451_v30  ;;  %637 = vpow2.f32 %v109_v40  ;;  %vm420_vm0 = vcmp.ge.f32.partialorder %v372_v38, 0.0  ;;  %v536_v7 = vadd.s32 %v919_v61, %v765_v35 }
  0x38   :  { %v632_v5 = vpop.eup %631  ;;  %v111_v43 = vmul.f32 1.442695, %v87_v41  ;;  %v357_v10 = vsub.f32 1.0, %v341_v53  ;;  %v54_v12 = vcvt.s32.f32 %v38_v58  ;;  %v277_v15 = vmax.f32 %v898_v3, 0.0 }
  0x39   :  { %v499_v16 = vmul.f32 %v483_v39, %v323_v34  ;;  %v634_v59 = vpop.eup %633  ;;  %v174_v8 = vmul.f32 0.6931472, %v632_v5  ;;  %v293_v52 = vmul.f32 %v53_v63, %v898_v3  ;;  %vm552_vm1 = vcmp.lt.s32.totalorder %v536_v7, 1024 }
  0x3a   :  { %v436_v18 = vmul.f32 %v634_v59, %v906_v55  ;;  %v39_v55 = vunpack.c.2.s8 %v716_v1  ;;  %639 = vpow2.f32 %v111_v43  ;;  %v342_v49 = vmul.f32 2.0, %v54_v12 }
  0x3b   :  { %v567_v60 = vsel %vm551_vm14, %v499_v16, -inf  ;;  %v636_v0 = vpop.eup %635  ;;  %v180_v2 = vsel %vm969_vm15, %v177_v46, %v174_v8  ;;  %v72_v24 = vand.u32 2147483647, %v986_v13  ;;  %v373_v26 = vmul.f32 %v357_v10, %v898_v3 }
  0x3c   :  { %583 = vst [vmem:[%s1251_s2 + $0x20] sm:$0xff] %v567_v60  ;;  %v452_v9 = vsel %vm420_vm0, %v634_v59, %v436_v18  ;;  %v181_v50 = vadd.f32 1.0, %v636_v0  ;;  %v324_v28 = vadd.f32 %v308_v44, %v180_v2  ;;  %v184_v19 = vmul.f32 -0.5, %v636_v0 }
  0x3d   :  { %v468_v54 = vmul.f32 0.25, %v452_v9  ;;  %v55_v27 = vcvt.s32.f32 %v39_v55  ;;  %v88_v56 = vsub.f32 0.0, %v72_v24  ;;  %v73_v57 = vand.u32 2147483647, %v993_v47 }
  0x3e   :  { %641 = vlog2.f32 %v181_v50  ;;  %v185_v30 = vadd.f32 1.0, %v184_v19  ;;  %v309_v29 = vsub.f32 %v277_v15, %v293_v52  ;;  %v187_v63 = vand.u32 2147483647, %v636_v0 }
  0x3f   :  { %v484_v20 = vmul.f32 %v468_v54, %v452_v9  ;;  %643 = vrcp.f32 %v181_v50  ;;  %v1006_v34 = vadd.s32 %v919_v61, %v784_v51  ;;  %v358_v3 = vsub.f32 1.0, %v342_v49  ;;  %v1035_v50 = vld [vmem:[%s1249_s0 + $0x58] sm:$0xff] }
  0x40   :  { %v113_v36 = vmul.f32 1.442695, %v88_v56  ;;  %vm421_vm2 = vcmp.ge.f32.partialorder %v373_v26, 0.0  ;;  %v278_v17 = vmax.f32 %v939_v23, 0.0  ;;  %v343_v31 = vmul.f32 2.0, %v55_v27 }
  0x41   :  { %v500_v62 = vmul.f32 %v484_v20, %v324_v28  ;;  %v997_v32 = vpop.eup %637  ;;  %v294_v38 = vmul.f32 %v54_v12, %v939_v23  ;;  %v89_v39 = vsub.f32 0.0, %v73_v57  ;;  %v186_v45 = vmul.f32 %v636_v0, %v185_v30 }
  0x42   :  { %v190_v42 = vadd.f32 1.0, %v997_v32  ;;  %v193_v37 = vmul.f32 -0.5, %v997_v32  ;;  %v1015_v46 = vadd.s32 %v919_v61, %v816_v11  ;;  %v279_v48 = vmax.f32 %v962_v6, 0.0 }
  0x43   :  { %v568_v33 = vsel %vm552_vm1, %v500_v62, -inf  ;;  %vm1018_vm3 = vcmp.lt.f32.partialorder %v187_v63, 0.0004427343  ;;  %vm553_vm4 = vcmp.lt.s32.totalorder %v1006_v34, 1024  ;;  %v374_v16 = vmul.f32 %v358_v3, %v939_v23 }
  0x44   :  { %584 = vst [vmem:[%s1251_s2 + $0x28] sm:$0xff] %v568_v33  ;;  %645 = vlog2.f32 %v190_v42  ;;  %v1011_v40 = vpop.eup %639  ;;  %v514_v41 = vadd.s32 16, %v753_v25  ;;  %v295_v61 = vmul.f32 %v55_v27, %v962_v6  ;;  %v359_v44 = vsub.f32 1.0, %v343_v31 }
  0x45   :  { %647 = vrcp.f32 %v190_v42  ;;  %v199_v58 = vadd.f32 1.0, %v1011_v40  ;;  %v115_v60 = vmul.f32 1.442695, %v89_v39  ;;  %v194_v43 = vadd.f32 1.0, %v193_v37 }
  0x46   :  { %649 = vpow2.f32 %v113_v36  ;;  %v40_v2 = vunpack.c.2.s8 %v724_v4  ;;  %v196_v23 = vand.u32 2147483647, %v997_v32  ;;  %v202_v9 = vmul.f32 -0.5, %v1011_v40 }
  0x47   :  { %651 = vlog2.f32 %v199_v58  ;;  %v1038_v12 = vmul.u32 512, %v514_v41  ;;  %vm422_vm5 = vcmp.ge.f32.partialorder %v374_v16, 0.0  ;;  %v375_v55 = vmul.f32 %v359_v44, %v962_v6 }
  0x48   :  { %v642_v53 = vpop.eup %641  ;;  %653 = vrcp.f32 %v199_v58  ;;  %v195_v15 = vmul.f32 %v997_v32, %v194_v43  ;;  %v56_v20 = vcvt.s32.f32 %v40_v2  ;;  %v41_v19 = vunpack.c.2.s8 %v737_v14 }
  0x49   :  { %v644_v59 = vpop.eup %643  ;;  %v183_v8 = vmul.f32 0.6931472, %v642_v53  ;;  %655 = vpow2.f32 %v115_v60  ;;  %v74_v52 = vand.u32 2147483647, %v1035_v50  ;;  %vm1044_vm6 = vcmp.lt.f32.partialorder %v196_v23, 0.0004427343 }
  0x4a   :  { %v437_v18 = vmul.f32 %v644_v59, %v636_v0  ;;  %v310_v0 = vsub.f32 %v278_v17, %v294_v38  ;;  %vm554_vm7 = vcmp.lt.s32.totalorder %v1015_v46, 1024  ;;  %v203_v26 = vadd.f32 1.0, %v202_v9 }
  0x4b   :  { %v189_v7 = vsel %vm1018_vm3, %v186_v45, %v183_v8  ;;  %v311_v27 = vsub.f32 %v279_v48, %v295_v61  ;;  %v205_v6 = vand.u32 2147483647, %v1011_v40  ;;  %v1052_v33 = vadd.s32 %v1038_v12, %v750_v22 }
  0x4c   :  { %v453_v10 = vsel %vm421_vm2, %v644_v59, %v437_v18  ;;  %v325_v28 = vadd.f32 %v309_v29, %v189_v7  ;;  %v90_v30 = vsub.f32 0.0, %v74_v52  ;;  %vm423_vm8 = vcmp.ge.f32.partialorder %v375_v55, 0.0 }
  0x4d   :  { %v469_v54 = vmul.f32 0.25, %v453_v10  ;;  %v280_v3 = vmax.f32 %v986_v13, 0.0  ;;  %v344_v31 = vmul.f32 2.0, %v56_v20  ;;  %v57_v37 = vcvt.s32.f32 %v41_v19 }
  0x4e   :  { %v646_v49 = vpop.eup %645  ;;  %v204_v45 = vmul.f32 %v1011_v40, %v203_v26  ;;  %v117_v48 = vmul.f32 1.442695, %v90_v30  ;;  %vm1073_vm9 = vcmp.lt.f32.partialorder %v205_v6, 0.0004427343  ;;  %vm555_vm10 = vcmp.lt.s32.totalorder %v1052_v33, 1024 }
  0x4f   :  { %v485_v24 = vmul.f32 %v469_v54, %v453_v10  ;;  %v648_v56 = vpop.eup %647  ;;  %v192_v57 = vmul.f32 0.6931472, %v646_v49  ;;  %v296_v8 = vmul.f32 %v56_v20, %v986_v13  ;;  %v360_v2 = vsub.f32 1.0, %v344_v31  ;;  %v1093_v20 = vld [vmem:[%s1249_s0 + $0x68] sm:$0xff] }
  0x50   :  { %v1054_v29 = vpop.eup %649  ;;  %v438_v63 = vmul.f32 %v648_v56, %v997_v32  ;;  %v1068_v32 = vld [vmem:[%s1249_s0 + $0x60] sm:$0xff]  ;;  %v345_v23 = vmul.f32 2.0, %v57_v37  ;;  %v281_v62 = vmax.f32 %v993_v47, 0.0  ;;  %v297_v26 = vmul.f32 %v57_v37, %v993_v47 }
  0x51   :  { %v501_v42 = vmul.f32 %v485_v24, %v325_v28  ;;  %v198_v36 = vsel %vm1044_vm6, %v195_v15, %v192_v57  ;;  %v208_v17 = vadd.f32 1.0, %v1054_v29  ;;  %v652_v53 = vpop.eup %651  ;;  %v211_v59 = vmul.f32 -0.5, %v1054_v29 }
  0x52   :  { %v454_v39 = vsel %vm422_vm5, %v648_v56, %v438_v63  ;;  %v326_v5 = vadd.f32 %v310_v0, %v198_v36  ;;  %v654_v16 = vpop.eup %653  ;;  %v201_v41 = vmul.f32 0.6931472, %v652_v53  ;;  %v75_v18 = vand.u32 2147483647, %v1068_v32 }
  0x53   :  { %v569_v38 = vsel %vm553_vm4, %v501_v42, -inf  ;;  %v470_v58 = vmul.f32 0.25, %v454_v39  ;;  %657 = vlog2.f32 %v208_v17  ;;  %v1080_v61 = vpop.eup %655  ;;  %v439_v60 = vmul.f32 %v654_v16, %v1011_v40 }
  0x54   :  { %585 = vst [vmem:[%s1251_s2 + $0x30] sm:$0xff] %v569_v38  ;;  %659 = vrcp.f32 %v208_v17  ;;  %v207_v43 = vsel %vm1073_vm9, %v204_v45, %v201_v41  ;;  %v217_v7 = vadd.f32 1.0, %v1080_v61  ;;  %v214_v0 = vand.u32 2147483647, %v1054_v29 }
  0x55   :  { %v486_v44 = vmul.f32 %v470_v58, %v454_v39  ;;  %661 = vpow2.f32 %v117_v48  ;;  %v455_v10 = vsel %vm423_vm8, %v654_v16, %v439_v60  ;;  %v42_v28 = vunpack.c.2.s8 %v748_v21 }
  0x56   :  { %v327_v54 = vadd.f32 %v311_v27, %v207_v43  ;;  %v471_v15 = vmul.f32 0.25, %v455_v10  ;;  %v212_v40 = vadd.f32 1.0, %v211_v59  ;;  %663 = vlog2.f32 %v217_v7 }
  0x57   :  { %v502_v9 = vmul.f32 %v486_v44, %v326_v5  ;;  %v220_v52 = vmul.f32 -0.5, %v1080_v61  ;;  %665 = vrcp.f32 %v217_v7  ;;  %v91_v55 = vsub.f32 0.0, %v75_v18 }
  0x58   :  { %v487_v49 = vmul.f32 %v471_v15, %v455_v10  ;;  %v376_v24 = vmul.f32 %v360_v2, %v986_v13  ;;  %v361_v27 = vsub.f32 1.0, %v345_v23  ;;  %v58_v56 = vcvt.s32.f32 %v42_v28  ;;  %v1137_v23 = vld [vmem:[%s1249_s0 + $0x70] sm:$0xff] }
  0x59   :  { %v570_v19 = vsel %vm554_vm7, %v502_v9, -inf  ;;  %v119_v57 = vmul.f32 1.442695, %v91_v55  ;;  %v76_v46 = vand.u32 2147483647, %v1093_v20  ;;  %v213_v30 = vmul.f32 %v1054_v29, %v212_v40 }
  0x5a   :  { %586 = vst [vmem:[%s1251_s2 + $0x38] sm:$0xff] %v570_v19  ;;  %v503_v6 = vmul.f32 %v487_v49, %v327_v54  ;;  %vm1106_vm11 = vcmp.lt.f32.partialorder %v214_v0, 0.0004427343  ;;  %v43_v63 = vunpack.c.3.s8 %v716_v1  ;;  %v221_v17 = vadd.f32 1.0, %v220_v52 }
  0x5b   :  { %v223_v31 = vand.u32 2147483647, %v1080_v61  ;;  %667 = vpow2.f32 %v119_v57  ;;  %v92_v37 = vsub.f32 0.0, %v76_v46  ;;  %v312_v48 = vsub.f32 %v280_v3, %v296_v8 }
  0x5c   :  { %v571_v39 = vsel %vm555_vm10, %v503_v6, -inf  ;;  %vm424_vm12 = vcmp.ge.f32.partialorder %v376_v24, 0.0  ;;  %v540_v5 = vadd.s32 %v1038_v12, %v765_v35  ;;  %v377_v58 = vmul.f32 %v361_v27, %v993_v47 }
  0x5d   :  { %v658_v36 = vpop.eup %657  ;;  %587 = vst [vmem:[%s1251_s2 + $0x40] sm:$0xff] %v571_v39  ;;  %v346_v33 = vmul.f32 2.0, %v58_v56  ;;  %v313_v13 = vsub.f32 %v281_v62, %v297_v26  ;;  %v121_v16 = vmul.f32 1.442695, %v92_v37  ;;  %v222_v59 = vmul.f32 %v1080_v61, %v221_v17 }
  0x5e   :  { %v660_v38 = vpop.eup %659  ;;  %v210_v45 = vmul.f32 0.6931472, %v658_v36  ;;  %vm1129_vm13 = vcmp.lt.f32.partialorder %v223_v31, 0.0004427343  ;;  %vm425_vm14 = vcmp.ge.f32.partialorder %v377_v58, 0.0  ;;  %vm556_vm15 = vcmp.lt.s32.totalorder %v540_v5, 1024 }
  0x5f   :  { %v1116_v53 = vpop.eup %661  ;;  %v440_v1 = vmul.f32 %v660_v38, %v1054_v29  ;;  %v59_v29 = vcvt.s32.f32 %v43_v63  ;;  %v362_v7 = vsub.f32 1.0, %v346_v33  ;;  %v541_v28 = vadd.s32 %v1038_v12, %v784_v51  ;;  %v1163_v36 = vld [vmem:[%s1249_s0 + $0x78] sm:$0xff] }
  0x60   :  { %v216_v34 = vsel %vm1106_vm11, %v213_v30, %v210_v45  ;;  %v226_v3 = vadd.f32 1.0, %v1116_v53  ;;  %v664_v44 = vpop.eup %663  ;;  %v229_v47 = vmul.f32 -0.5, %v1116_v53  ;;  %v282_v54 = vmax.f32 %v1035_v50, 0.0 }
  0x61   :  { %v456_v41 = vsel %vm424_vm12, %v660_v38, %v440_v1  ;;  %v328_v60 = vadd.f32 %v312_v48, %v216_v34  ;;  %v666_v43 = vpop.eup %665  ;;  %v219_v2 = vmul.f32 0.6931472, %v664_v44  ;;  %v347_v15 = vmul.f32 2.0, %v59_v29 }
  0x62   :  { %v472_v18 = vmul.f32 0.25, %v456_v41  ;;  %669 = vlog2.f32 %v226_v3  ;;  %v441_v10 = vmul.f32 %v666_v43, %v1080_v61  ;;  %v230_v52 = vadd.f32 1.0, %v229_v47 }
  0x63   :  { %671 = vrcp.f32 %v226_v3  ;;  %v225_v0 = vsel %vm1129_vm13, %v222_v59, %v219_v2  ;;  %v77_v55 = vand.u32 2147483647, %v1137_v23  ;;  %v298_v61 = vmul.f32 %v58_v56, %v1035_v50 }
  0x64   :  { %v488_v9 = vmul.f32 %v472_v18, %v456_v41  ;;  %673 = vpow2.f32 %v121_v16  ;;  %v457_v19 = vsel %vm425_vm14, %v666_v43, %v441_v10  ;;  %v329_v24 = vadd.f32 %v313_v13, %v225_v0 }
  0x65   :  { %v1146_v49 = vpop.eup %667  ;;  %v473_v62 = vmul.f32 0.25, %v457_v19  ;;  %v378_v26 = vmul.f32 %v362_v7, %v1035_v50  ;;  %v232_v57 = vand.u32 2147483647, %v1116_v53  ;;  %v44_v6 = vunpack.c.3.s8 %v724_v4 }
  0x66   :  { %v504_v40 = vmul.f32 %v488_v9, %v328_v60  ;;  %v235_v46 = vadd.f32 1.0, %v1146_v49  ;;  %vm557_vm0 = vcmp.lt.s32.totalorder %v541_v28, 1024  ;;  %v93_v42 = vsub.f32 0.0, %v77_v55 }
  0x67   :  { %v489_v30 = vmul.f32 %v473_v62, %v457_v19  ;;  %v231_v63 = vmul.f32 %v1116_v53, %v230_v52  ;;  %v542_v50 = vadd.s32 %v1038_v12, %v816_v11  ;;  %v363_v56 = vsub.f32 1.0, %v347_v15 }
  0x68   :  { %v572_v27 = vsel %vm556_vm15, %v504_v40, -inf  ;;  %675 = vlog2.f32 %v235_v46  ;;  %v238_v17 = vmul.f32 -0.5, %v1146_v49  ;;  %v123_v31 = vmul.f32 1.442695, %v93_v42 }
  0x69   :  { %588 = vst [vmem:[%s1251_s2 + $0x48] sm:$0xff] %v572_v27  ;;  %v505_v4 = vmul.f32 %v489_v30, %v329_v24  ;;  %677 = vrcp.f32 %v235_v46  ;;  %vm1166_vm1 = vcmp.lt.f32.partialorder %v232_v57, 0.0004427343  ;;  %v314_v39 = vsub.f32 %v282_v54, %v298_v61 }
  0x6a   :  { %vm426_vm2 = vcmp.ge.f32.partialorder %v378_v26, 0.0  ;;  %v60_v12 = vcvt.s32.f32 %v44_v6  ;;  %679 = vpow2.f32 %v123_v31  ;;  %v78_v5 = vand.u32 2147483647, %v1163_v36 }
  0x6b   :  { %v573_v48 = vsel %vm557_vm0, %v505_v4, -inf  ;;  %v283_v34 = vmax.f32 %v1068_v32, 0.0  ;;  %v299_v13 = vmul.f32 %v59_v29, %v1068_v32  ;;  %v515_v3 = vadd.s32 24, %v753_v25 }
  0x6c   :  { %v670_v37 = vpop.eup %669  ;;  %589 = vst [vmem:[%s1251_s2 + $0x50] sm:$0xff] %v573_v48  ;;  %v239_v41 = vadd.f32 1.0, %v238_v17  ;;  %v379_v59 = vmul.f32 %v363_v56, %v1068_v32  ;;  %v241_v60 = vand.u32 2147483647, %v1146_v49  ;;  %v348_v18 = vmul.f32 2.0, %v60_v12 }
  0x6d   :  { %v672_v45 = vpop.eup %671  ;;  %v228_v1 = vmul.f32 0.6931472, %v670_v37  ;;  %v45_v29 = vunpack.c.3.s8 %v737_v14  ;;  %v1188_v25 = vmul.u32 512, %v515_v3  ;;  %vm558_vm3 = vcmp.lt.s32.totalorder %v542_v50, 1024 }
  0x6e   :  { %v1172_v58 = vpop.eup %673  ;;  %v442_v33 = vmul.f32 %v672_v45, %v1116_v53  ;;  %v94_v53 = vsub.f32 0.0, %v78_v5  ;;  %v240_v9 = vmul.f32 %v1146_v49, %v239_v41  ;;  %vm1192_vm4 = vcmp.lt.f32.partialorder %v241_v60, 0.0004427343 }
  0x6f   :  { %v234_v16 = vsel %vm1166_vm1, %v231_v63, %v228_v1  ;;  %v244_v8 = vadd.f32 1.0, %v1172_v58  ;;  %v247_v2 = vmul.f32 -0.5, %v1172_v58  ;;  %v315_v28 = vsub.f32 %v283_v34, %v299_v13 }
  0x70   :  { %v458_v44 = vsel %vm426_vm2, %v672_v45, %v442_v33  ;;  %v330_v47 = vadd.f32 %v314_v39, %v234_v16  ;;  %v125_v7 = vmul.f32 1.442695, %v94_v53  ;;  %v364_v54 = vsub.f32 1.0, %v348_v18 }
  0x71   :  { %v474_v43 = vmul.f32 0.25, %v458_v44  ;;  %681 = vlog2.f32 %v244_v8  ;;  %vm427_vm5 = vcmp.ge.f32.partialorder %v379_v59, 0.0  ;;  %v61_v19 = vcvt.s32.f32 %v45_v29 }
  0x72   :  { %683 = vrcp.f32 %v244_v8  ;;  %v676_v10 = vpop.eup %675  ;;  %v543_v55 = vadd.s32 %v1188_v25, %v750_v22  ;;  %v248_v24 = vadd.f32 1.0, %v247_v2  ;;  %v284_v62 = vmax.f32 %v1093_v20, 0.0 }
  0x73   :  { %v490_v32 = vmul.f32 %v474_v43, %v458_v44  ;;  %685 = vpow2.f32 %v125_v7  ;;  %v678_v15 = vpop.eup %677  ;;  %v237_v40 = vmul.f32 0.6931472, %v676_v10  ;;  %v250_v57 = vand.u32 2147483647, %v1172_v58 }
  0x74   :  { %v443_v52 = vmul.f32 %v678_v15, %v1146_v49  ;;  %v680_v61 = vpop.eup %679  ;;  %v300_v46 = vmul.f32 %v60_v12, %v1093_v20  ;;  %v380_v22 = vmul.f32 %v364_v54, %v1093_v20  ;;  %v46_v30 = vunpack.c.3.s8 %v748_v21 }
  0x75   :  { %v506_v14 = vmul.f32 %v490_v32, %v330_v47  ;;  %v243_v27 = vsel %vm1192_vm4, %v240_v9, %v237_v40  ;;  %v253_v6 = vadd.f32 1.0, %v680_v61  ;;  %v349_v50 = vmul.f32 2.0, %v61_v19 }
  0x76   :  { %v459_v49 = vsel %vm427_vm5, %v678_v15, %v443_v52  ;;  %v331_v42 = vadd.f32 %v315_v28, %v243_v27  ;;  %vm559_vm6 = vcmp.lt.s32.totalorder %v543_v55, 1024  ;;  %v249_v56 = vmul.f32 %v1172_v58, %v248_v24 }
  0x77   :  { %v574_v26 = vsel %vm558_vm3, %v506_v14, -inf  ;;  %v475_v63 = vmul.f32 0.25, %v459_v49  ;;  %687 = vlog2.f32 %v253_v6  ;;  %vm1211_vm7 = vcmp.lt.f32.partialorder %v250_v57, 0.0004427343 }
  0x78   :  { %590 = vst [vmem:[%s1251_s2 + $0x58] sm:$0xff] %v574_v26  ;;  %v256_v37 = vmul.f32 -0.5, %v680_v61  ;;  %689 = vrcp.f32 %v253_v6  ;;  %v316_v39 = vsub.f32 %v284_v62, %v300_v46  ;;  %vm428_vm8 = vcmp.ge.f32.partialorder %v380_v22, 0.0 }
  0x79   :  { %v491_v17 = vmul.f32 %v475_v63, %v459_v49  ;;  %v62_v21 = vcvt.s32.f32 %v46_v30  ;;  %v365_v48 = vsub.f32 1.0, %v349_v50  ;;  %v544_v33 = vadd.s32 %v1188_v25, %v765_v35 }
  0x7a   :  { %v257_v3 = vadd.f32 1.0, %v256_v37  ;;  %v285_v44 = vmax.f32 %v1137_v23, 0.0  ;;  %v301_v60 = vmul.f32 %v61_v19, %v1137_v23  ;;  %v545_v15 = vadd.s32 %v1188_v25, %v784_v51 }
  0x7b   :  { %v682_v4 = vpop.eup %681  ;;  %v507_v12 = vmul.f32 %v491_v17, %v331_v42  ;;  %v350_v8 = vmul.f32 2.0, %v62_v21  ;;  %v381_v18 = vmul.f32 %v365_v48, %v1137_v23  ;;  %vm560_vm9 = vcmp.lt.s32.totalorder %v544_v33, 1024 }
  0x7c   :  { %v684_v38 = vpop.eup %683  ;;  %v246_v20 = vmul.f32 0.6931472, %v682_v4  ;;  %v258_v47 = vmul.f32 %v680_v61, %v257_v3  ;;  %v317_v10 = vsub.f32 %v285_v44, %v301_v60  ;;  %v286_v19 = vmax.f32 %v1163_v36, 0.0 }
  0x7d   :  { %v444_v45 = vmul.f32 %v684_v38, %v1172_v58  ;;  %v686_v1 = vpop.eup %685  ;;  %v575_v34 = vsel %vm559_vm6, %v507_v12, -inf  ;;  %v259_v58 = vand.u32 2147483647, %v680_v61  ;;  %v366_v7 = vsub.f32 1.0, %v350_v8 }
  0x7e   :  { %v252_v5 = vsel %vm1211_vm7, %v249_v56, %v246_v20  ;;  %v262_v16 = vadd.f32 1.0, %v686_v1  ;;  %591 = vst [vmem:[%s1251_s2 + $0x60] sm:$0xff] %v575_v34  ;;  %v265_v53 = vmul.f32 -0.5, %v686_v1  ;;  %vm429_vm11 = vcmp.ge.f32.partialorder %v381_v18, 0.0 }
  0x7f   :  { %v460_v13 = vsel %vm428_vm8, %v684_v38, %v444_v45  ;;  %v332_v41 = vadd.f32 %v316_v39, %v252_v5  ;;  %vm1227_vm10 = vcmp.lt.f32.partialorder %v259_v58, 0.0004427343  ;;  %v268_v14 = vand.u32 2147483647, %v686_v1 }
  0x80   :  { %v476_v59 = vmul.f32 0.25, %v460_v13  ;;  %691 = vlog2.f32 %v262_v16  ;;  %v266_v23 = vadd.f32 1.0, %v265_v53  ;;  %v302_v52 = vmul.f32 %v62_v21, %v1163_v36 }
  0x81   :  { %693 = vrcp.f32 %v262_v16  ;;  %v688_v43 = vpop.eup %687  ;;  %v382_v55 = vmul.f32 %v366_v7, %v1163_v36  ;;  %vm269_vm12 = vcmp.lt.f32.partialorder %v268_v14, 0.0004427343  ;;  %vm561_vm13 = vcmp.lt.s32.totalorder %v545_v15, 1024 }
  0x82   :  { %v492_v35 = vmul.f32 %v476_v59, %v460_v13  ;;  %v690_v32 = vpop.eup %689  ;;  %v255_v9 = vmul.f32 0.6931472, %v688_v43  ;;  %v318_v49 = vsub.f32 %v286_v19, %v302_v52  ;;  %v546_v63 = vadd.s32 %v1188_v25, %v816_v11 }
  0x83   :  { %v445_v28 = vmul.f32 %v690_v32, %v680_v61  ;;  %v267_v61 = vmul.f32 %v686_v1, %v266_v23  ;;  %vm430_vm14 = vcmp.ge.f32.partialorder %v382_v55, 0.0 }
  0x84   :  { %v508_v29 = vmul.f32 %v492_v35, %v332_v41  ;;  %v261_v54 = vsel %vm1227_vm10, %v258_v47, %v255_v9  ;;  %vm562_vm15 = vcmp.lt.s32.totalorder %v546_v63, 1024 }
  0x85   :  { %v461_v40 = vsel %vm429_vm11, %v690_v32, %v445_v28  ;;  %v333_v24 = vadd.f32 %v317_v10, %v261_v54 }
  0x86   :  { %v576_v0 = vsel %vm560_vm9, %v508_v29, -inf  ;;  %v477_v62 = vmul.f32 0.25, %v461_v40 }
  0x87   :  { %592 = vst [vmem:[%s1251_s2 + $0x68] sm:$0xff] %v576_v0 }
  0x88   :  { %v493_v27 = vmul.f32 %v477_v62, %v461_v40 }
  0x8a   :  { %v692_v26 = vpop.eup %691  ;;  %v509_v51 = vmul.f32 %v493_v27, %v333_v24 }
  0x8b   :  { %v694_v57 = vpop.eup %693  ;;  %v264_v46 = vmul.f32 0.6931472, %v692_v26 }
  0x8c   :  { %v446_v22 = vmul.f32 %v694_v57, %v686_v1  ;;  %v577_v30 = vsel %vm561_vm13, %v509_v51, -inf }
  0x8d   :  { %v270_v6 = vsel %vm269_vm12, %v267_v61, %v264_v46  ;;  %593 = vst [vmem:[%s1251_s2 + $0x70] sm:$0xff] %v577_v30 }
  0x8e   :  { %v462_v42 = vsel %vm430_vm14, %v694_v57, %v446_v22  ;;  %v334_v36 = vadd.f32 %v318_v49, %v270_v6 }
  0x8f   :  { %v478_v50 = vmul.f32 0.25, %v462_v42 }
  0x91   :  { %v494_v56 = vmul.f32 %v478_v50, %v462_v42 }
  0x93   :  { %v510_v4 = vmul.f32 %v494_v56, %v334_v36 }
  0x95   :  { %v578_v17 = vsel %vm562_vm15, %v510_v4, -inf }
  0x96   :  { %594 = vst [vmem:[%s1251_s2 + $0x78] sm:$0xff] %v578_v17 }

</bundles_post_ra>
